<compile_context>
chip_gen: v6e
topology: v6e:2x2x1
jax: 0.10.0
libtpu: 0.0.40
codegen_flags: <defaults>
</compile_context>

<pallas_src>
import jax
import jax.numpy as jnp
from jax.experimental import pallas as pl
from jax.experimental.pallas import tpu as pltpu

LANE = 128    # TPU lane width
SUBLANE = 8   # f32 sublane width


def _round_up(x, m):
    return ((x + m - 1) // m) * m


def _cdiv(a, b):
    return (a + b - 1) // b


def mlp_kernel(x_ref, w1_ref, b1_ref, w2_ref, b2_ref, o_ref):
    # Hidden layer: x @ W1 + b1, ReLU  (matmul on MXU, bias/ReLU on VPU).
    h = jnp.dot(x_ref[...], w1_ref[...], preferred_element_type=jnp.float32)
    h = jnp.maximum(h + b1_ref[...], 0.0)
    # Output layer: h @ W2 + b2  (all f32, no downcast between matmuls).
    y = jnp.dot(h, w2_ref[...], preferred_element_type=jnp.float32)
    o_ref[...] = (y + b2_ref[...]).astype(o_ref.dtype)


def _choose_tile_b(B, max_tile_b, split_threshold):
    """Pick a batch-tile size (multiple of 8 sublanes)."""
    B8 = _round_up(B, SUBLANE)
    if B8 > max_tile_b:
        return max_tile_b
    if B8 >= split_threshold:
        # Two grid steps so dimension_semantics=("parallel",) can put one tile
        # on each TensorCore of a v7x chip (harmless on single-TC v5e/v6e).
        return _round_up(_cdiv(B8, 2), SUBLANE)
    return B8


def net_forward(x, w1, b1, w2, b2, *, max_tile_b=4096, split_threshold=256):
    """Pallas forward pass of Net. x: [B, n_feature] float32."""
    B, n_feature = x.shape
    n_hidden = w1.shape[1]
    n_output = w2.shape[1]

    # Lane-dense hidden dim: pad n_hidden up to a multiple of 128 with zero
    # W1 columns / b1 entries / W2 rows. Numerically exact (ReLU(0)=0, zero
    # W2 rows contribute nothing) and makes matmul-1's N, the ReLU/bias VPU
    # work, and matmul-2's K all 128-aligned.
    n_hid_p = _round_up(n_hidden, LANE)
    if n_hid_p != n_hidden:
        w1 = jnp.pad(w1, ((0, 0), (0, n_hid_p - n_hidden)))
        b1 = jnp.pad(b1, ((0, 0), (0, n_hid_p - n_hidden)))
        w2 = jnp.pad(w2, ((0, n_hid_p - n_hidden), (0, 0)))

    tile_b = _choose_tile_b(B, max_tile_b, split_threshold)
    grid = (_cdiv(B, tile_b),)

    # Advisory cost hint (true, unpadded dims).
    flops = 2 * B * (n_feature * n_hidden + n_hidden * n_output)
    bytes_accessed = 4 * (B * n_feature                       # x
                          + n_feature * n_hidden + n_hidden   # W1, b1
                          + n_hidden * n_output + n_output    # W2, b2
                          + B * n_output)                     # out

    # VMEM budget guard: resident weights + double-buffered activation tiles
    # + the in-kernel hidden activation. Only matters if this net is scaled
    # up (v7x has 64 MiB physical VMEM, ~32 MiB default scoped).
    resident_bytes = 4 * (n_feature * n_hid_p + n_hid_p
                          + n_hid_p * n_output + n_output)
    per_step_bytes = 4 * (2 * tile_b * n_feature      # double-buffered x tiles
                          + 2 * tile_b * n_output     # double-buffered out tiles
                          + tile_b * n_hid_p)         # hidden activation
    vmem_needed = resident_bytes + per_step_bytes
    vmem_limit = None
    if vmem_needed > 24 * 1024 * 1024:
        # TODO(synk): for genuinely large layers, switch weights to K/N-tiled
        # BlockSpecs instead of whole-array VMEM residency.
        vmem_limit = min(_round_up(vmem_needed, 1 << 20) + (8 << 20), 100 << 20)

    out = pl.pallas_call(
        mlp_kernel,
        out_shape=jax.ShapeDtypeStruct((B, n_output), x.dtype),
        grid=grid,
        in_specs=[
            # Activations: batch tile, pipelined over the grid. Ragged last
            # tile is handled by Pallas boundary masking (no wrapper pad).
            pl.BlockSpec((tile_b, n_feature), lambda i: (i, 0)),
            # Weights / biases: whole-array VMEM residents (no per-step DMA).
            pl.BlockSpec(memory_space=pltpu.MemorySpace.VMEM),  # W1 (hid-padded)
            pl.BlockSpec(memory_space=pltpu.MemorySpace.VMEM),  # b1 (hid-padded)
            pl.BlockSpec(memory_space=pltpu.MemorySpace.VMEM),  # W2 (hid-padded)
            pl.BlockSpec(memory_space=pltpu.MemorySpace.VMEM),  # b2
        ],
        out_specs=pl.BlockSpec((tile_b, n_output), lambda i: (i, 0)),
        compiler_params=pltpu.CompilerParams(
            dimension_semantics=("parallel",),
            vmem_limit_bytes=vmem_limit,
        ),
        cost_estimate=pl.CostEstimate(
            flops=flops, transcendentals=0, bytes_accessed=bytes_accessed),
    )(x, w1, b1, w2, b2)

    return out


def init_params(key, n_feature, n_hidden, n_output):
    """Deterministic parameter init (shapes match torch.nn.Linear layers)."""
    k1, k2, k3, k4 = jax.random.split(key, 4)
    # stored transposed relative to PyTorch: [in, out]
    w1 = jax.random.normal(k1, (n_feature, n_hidden), jnp.float32) * 0.1
    b1 = jax.random.normal(k2, (1, n_hidden), jnp.float32) * 0.1
    w2 = jax.random.normal(k3, (n_hidden, n_output), jnp.float32) * 0.1
    b2 = jax.random.normal(k4, (1, n_output), jnp.float32) * 0.1
    return w1, b1, w2, b2


def _ref(x, w1, b1, w2, b2):
    return jnp.maximum(x @ w1 + b1, 0.0) @ w2 + b2


if __name__ == "__main__":
    key = jax.random.PRNGKey(0)

    # 1) Small shapes (single fat batch tile, single grid step).
    B, n_feature, n_hidden, n_output = 64, 8, 32, 8
    kx, kp = jax.random.split(key)
    x = jax.random.normal(kx, (B, n_feature), jnp.float32)
    w1, b1, w2, b2 = init_params(kp, n_feature, n_hidden, n_output)

    out = jax.block_until_ready(net_forward(x, w1, b1, w2, b2))
    ref = _ref(x, w1, b1, w2, b2)
    assert out.shape == (B, n_output)
    assert jnp.allclose(out, ref, atol=1e-5, rtol=1e-5)

    # 2) Ragged batch (exercises Pallas boundary-block masking, no x pad).
    x2 = x[:21]
    out2 = jax.block_until_ready(net_forward(x2, w1, b1, w2, b2))
    ref2 = _ref(x2, w1, b1, w2, b2)
    assert out2.shape == (21, n_output)
    assert jnp.allclose(out2, ref2, atol=1e-5, rtol=1e-5)

    # 3) Mid-size batch (exercises the 2-way tile split / multi-step grid).
    B3 = 300
    x3 = jax.random.normal(jax.random.PRNGKey(3), (B3, n_feature), jnp.float32)
    out3 = jax.block_until_ready(net_forward(x3, w1, b1, w2, b2))
    ref3 = _ref(x3, w1, b1, w2, b2)
    assert out3.shape == (B3, n_output)
    assert jnp.allclose(out3, ref3, atol=1e-5, rtol=1e-5)

    # 4) Original Mofan-regression shapes: Net(1, 10, 1) on 100 points.
    Bm, nf, nh, no = 100, 1, 10, 1
    xm = jnp.linspace(-1.0, 1.0, Bm, dtype=jnp.float32).reshape(Bm, 1)
    w1m, b1m, w2m, b2m = init_params(jax.random.PRNGKey(4), nf, nh, no)
    outm = jax.block_until_ready(net_forward(xm, w1m, b1m, w2m, b2m))
    refm = _ref(xm, w1m, b1m, w2m, b2m)
    assert outm.shape == (Bm, no)
    assert jnp.allclose(outm, refm, atol=1e-5, rtol=1e-5)

    print("KERNEL_OK")
</pallas_src>

<mosaic_0001>
module attributes {stable_mosaic.version = 11 : i64} {
  func.func @mlp_kernel(%arg0: i32, %arg1: memref<64x8xf32, #tpu.memory_space<vmem>>, %arg2: memref<8x128xf32, #tpu.memory_space<vmem>>, %arg3: memref<1x128xf32, #tpu.memory_space<vmem>>, %arg4: memref<128x8xf32, #tpu.memory_space<vmem>>, %arg5: memref<1x8xf32, #tpu.memory_space<vmem>>, %arg6: memref<64x8xf32, #tpu.memory_space<vmem>>) attributes {dimension_semantics = [#tpu.dimension_semantics<parallel>], iteration_bounds = array<i64: 1>, scalar_prefetch = 0 : i64, scratch_operands = 0 : i64, tpu.core_type = #tpu.core_type<tc>, window_params = [{transform_indices = @transform_0, window_bounds = array<i64: 64, 8>}, {pipeline_mode = #tpu.pipeline_mode<synchronous>, transform_indices = @transform_1, window_bounds = array<i64: 8, 128>}, {pipeline_mode = #tpu.pipeline_mode<synchronous>, transform_indices = @transform_2, window_bounds = array<i64: 1, 128>}, {pipeline_mode = #tpu.pipeline_mode<synchronous>, transform_indices = @transform_3, window_bounds = array<i64: 128, 8>}, {pipeline_mode = #tpu.pipeline_mode<synchronous>, transform_indices = @transform_4, window_bounds = array<i64: 1, 8>}, {transform_indices = @transform_5, window_bounds = array<i64: 64, 8>}]} {
    %c0 = arith.constant 0 : index
    %c0_0 = arith.constant 0 : index
    %0 = vector.load %arg1[%c0, %c0_0] : memref<64x8xf32, #tpu.memory_space<vmem>>, vector<64x8xf32>
    %c0_1 = arith.constant 0 : index
    %c0_2 = arith.constant 0 : index
    %1 = vector.load %arg2[%c0_1, %c0_2] : memref<8x128xf32, #tpu.memory_space<vmem>>, vector<8x128xf32>
    %cst = arith.constant dense<0.000000e+00> : vector<64x128xf32>
    %2 = tpu.matmul %0, %1, %cst {dimension_numbers = #tpu.dot_dimension_numbers<[1], [0], [0], [1], [0, 0, 1, 1], [], []>} : vector<64x8xf32>, vector<8x128xf32>, vector<64x128xf32> -> vector<64x128xf32>
    %c0_3 = arith.constant 0 : index
    %c0_4 = arith.constant 0 : index
    %3 = vector.load %arg3[%c0_3, %c0_4] : memref<1x128xf32, #tpu.memory_space<vmem>>, vector<1x128xf32>
    %4 = vector.broadcast %3 : vector<1x128xf32> to vector<64x128xf32>
    %5 = arith.addf %2, %4 : vector<64x128xf32>
    %cst_5 = arith.constant 0.000000e+00 : f32
    %6 = vector.broadcast %cst_5 : f32 to vector<64x128xf32>
    %7 = arith.maximumf %5, %6 : vector<64x128xf32>
    %c0_6 = arith.constant 0 : index
    %c0_7 = arith.constant 0 : index
    %8 = vector.load %arg4[%c0_6, %c0_7] : memref<128x8xf32, #tpu.memory_space<vmem>>, vector<128x8xf32>
    %cst_8 = arith.constant dense<0.000000e+00> : vector<64x8xf32>
    %9 = tpu.matmul %7, %8, %cst_8 {dimension_numbers = #tpu.dot_dimension_numbers<[1], [0], [0], [1], [0, 0, 1, 1], [], []>} : vector<64x128xf32>, vector<128x8xf32>, vector<64x8xf32> -> vector<64x8xf32>
    %c0_9 = arith.constant 0 : index
    %c0_10 = arith.constant 0 : index
    %10 = vector.load %arg5[%c0_9, %c0_10] : memref<1x8xf32, #tpu.memory_space<vmem>>, vector<1x8xf32>
    %11 = vector.broadcast %10 : vector<1x8xf32> to vector<64x8xf32>
    %12 = arith.addf %9, %11 : vector<64x8xf32>
    %c0_11 = arith.constant 0 : index
    %c0_12 = arith.constant 0 : index
    %13 = vector.load %arg6[%c0_11, %c0_12] : memref<64x8xf32, #tpu.memory_space<vmem>>, vector<64x8xf32>
    tpu.vector_store %arg6[%c0_11, %c0_12], %12 {strides = array<i32>} : memref<64x8xf32, #tpu.memory_space<vmem>>, vector<64x8xf32>,
    return
  }
  func.func @transform_0(%arg0: i32) -> (i32, i32) {
    %c0_i32 = arith.constant 0 : i32
    %c0_i32_0 = arith.constant 0 : i32
    return %arg0, %c0_i32 : i32, i32
  }
  func.func @transform_1(%arg0: i32) -> (i32, i32) {
    %c0_i32 = arith.constant 0 : i32
    %c0_i32_0 = arith.constant 0 : i32
    %c0_i32_1 = arith.constant 0 : i32
    return %c0_i32, %c0_i32_0 : i32, i32
  }
  func.func @transform_2(%arg0: i32) -> (i32, i32) {
    %c0_i32 = arith.constant 0 : i32
    %c0_i32_0 = arith.constant 0 : i32
    %c0_i32_1 = arith.constant 0 : i32
    return %c0_i32, %c0_i32_0 : i32, i32
  }
  func.func @transform_3(%arg0: i32) -> (i32, i32) {
    %c0_i32 = arith.constant 0 : i32
    %c0_i32_0 = arith.constant 0 : i32
    %c0_i32_1 = arith.constant 0 : i32
    return %c0_i32, %c0_i32_0 : i32, i32
  }
  func.func @transform_4(%arg0: i32) -> (i32, i32) {
    %c0_i32 = arith.constant 0 : i32
    %c0_i32_0 = arith.constant 0 : i32
    %c0_i32_1 = arith.constant 0 : i32
    return %c0_i32, %c0_i32_0 : i32, i32
  }
  func.func @transform_5(%arg0: i32) -> (i32, i32) {
    %c0_i32 = arith.constant 0 : i32
    %c0_i32_0 = arith.constant 0 : i32
    return %arg0, %c0_i32 : i32, i32
  }
}

</mosaic_0001>

<bundles_post_ra>
// kernel: tpu_custom_call.1
= control target key start
LH: loop header
LB: loop body
LE: loop exit
PB: predicated region body
PF: predicated region fallthrough
CT: control target
= control target key end

     0   :  { %vm36_vm0 = vcmask 64512   ;;  %s598_s1 = inlined_call_operand.vmem [shape: f32[8,128], index: 1, kind: input, shape index: {}]   ;;  %s599_s0 = inlined_call_operand.vmem [shape: f32[64,8], index: 0, kind: input, shape index: {}]   ;;  %s600_s3 = inlined_call_operand.vmem [shape: f32[128,8], index: 3, kind: input, shape index: {}]   ;;  %s601_s2 = inlined_call_operand.vmem [shape: f32[1,128], index: 2, kind: input, shape index: {}]   ;;  %s602_s4 = inlined_call_operand.vmem [shape: f32[1,8], index: 4, kind: input, shape index: {}]   ;;  %s603_s5 = inlined_call_operand.vmem [shape: f32[64,8], index: 5, kind: output, shape index: {}]  }
   0x1   :  { %v28_v0 = vld [vmem:[%s598_s1] sm:$0xff]  ;;  %v21_v2 = vld [vmem:[%s599_s0 + $0x8] sm:$0xff]  ;;  %v22_v3 = vld [vmem:[%s599_s0 + $0x10] sm:$0xff] }
   0x2   :  { %v20_v1 = vld [vmem:[%s599_s0] sm:$0xff]  ;;  %357 = vmatprep.subr.mxu0 %v28_v0  ;;  %v189_v4 = vld [vmem:[%s600_s3 + $0x78] sm:$0xff]  ;;  %v188_v5 = vld [vmem:[%s600_s3 + $0x70] sm:$0xff] }
   0x3   :  { %359 = vmatprep.mubr.msk.f32.mxu0 %vm36_vm0, %v20_v1  ;;  %358 = vmatpush3.msra.mxu0 %v28_v0  ;;  %v23_v6 = vld [vmem:[%s599_s0 + $0x18] sm:$0xff]  ;;  %v24_v7 = vld [vmem:[%s599_s0 + $0x20] sm:$0xff]  ;;  %v187_v8 = vld [vmem:[%s600_s3 + $0x68] sm:$0xff] }
   0x4   :  { %360 = vmatmul.mubr.msk.f32.vlgmr.msra.gmra.mxu0 %vm36_vm0, %v21_v2  ;;  %371 = vmatprep.subr.mxu0 %v189_v4  ;;  %v25_v9 = vld [vmem:[%s599_s0 + $0x28] sm:$0xff]  ;;  %v186_v10 = vld [vmem:[%s600_s3 + $0x60] sm:$0xff]  ;;  %v26_v11 = vld [vmem:[%s599_s0 + $0x30] sm:$0xff] }
   0x5   :  { %362 = vmatprep.mubr.msk.f32.mxu0 %vm36_vm0, %v22_v3  ;;  %372 = vmatpush3.msra.mxu0 %v189_v4  ;;  %v185_v12 = vld [vmem:[%s600_s3 + $0x58] sm:$0xff]  ;;  %v184_v14 = vld [vmem:[%s600_s3 + $0x50] sm:$0xff]  ;;  %v183_v15 = vld [vmem:[%s600_s3 + $0x48] sm:$0xff] }
   0x6   :  { %415 = vmatprep.subr.mxu1 %v189_v4  ;;  %373 = vmatprep.subr.mxu0 %v188_v5  ;;  %v27_v13 = vld [vmem:[%s599_s0 + $0x38] sm:$0xff]  ;;  %v182_v16 = vld [vmem:[%s600_s3 + $0x40] sm:$0xff]  ;;  %v180_v18 = vld [vmem:[%s600_s3 + $0x30] sm:$0xff] }
   0x7   :  { %431 = vmatpush3.msra.mxu1 %v189_v4  ;;  %374 = vmatpush3.msra.mxu0 %v188_v5  ;;  %v181_v17 = vld [vmem:[%s600_s3 + $0x38] sm:$0xff]  ;;  %v179_v19 = vld [vmem:[%s600_s3 + $0x28] sm:$0xff]  ;;  %v178_v20 = vld [vmem:[%s600_s3 + $0x20] sm:$0xff] }
   0x8   :  { %363 = vmatmul.mubr.msk.f32.gmra.mxu0 %vm36_vm0, %v23_v6  ;;  %416 = vmatprep.subr.mxu1 %v188_v5  ;;  %v177_v21 = vld [vmem:[%s600_s3 + $0x18] sm:$0xff]  ;;  %v176_v22 = vld [vmem:[%s600_s3 + $0x10] sm:$0xff]  ;;  %v175_v23 = vld [vmem:[%s600_s3 + $0x8] sm:$0xff] }
   0x9   :  { %365 = vmatprep.mubr.msk.f32.mxu0 %vm36_vm0, %v24_v7  ;;  %375 = vmatprep.subr.mxu0 %v187_v8  ;;  %v174_v24 = vld [vmem:[%s600_s3] sm:$0xff] }
   0xa   :  { %432 = vmatpush3.msra.mxu1 %v188_v5  ;;  %376 = vmatpush3.msra.mxu0 %v187_v8  ;;  %v314_v25 = vld [vmem:[%s601_s2] ss:$0 sm:$0xff] }
   0xb   :  { %417 = vmatprep.subr.mxu1 %v187_v8  ;;  %377 = vmatprep.subr.mxu0 %v186_v10  ;;  %v323_v50 = vld [vmem:[%s602_s4] ss:$0 sm:$0xff] }
   0xc   :  { %366 = vmatmul.mubr.msk.f32.gmra.mxu0 %vm36_vm0, %v25_v9  ;;  %433 = vmatpush3.msra.mxu1 %v187_v8 }
   0xd   :  { %368 = vmatprep.mubr.msk.f32.mxu0 %vm36_vm0, %v26_v11  ;;  %378 = vmatpush3.msra.mxu0 %v186_v10 }
   0xe   :  { %379 = vmatprep.subr.mxu0 %v185_v12  ;;  %418 = vmatprep.subr.mxu1 %v186_v10 }
   0xf   :  { %380 = vmatpush3.msra.mxu0 %v185_v12  ;;  %434 = vmatpush3.msra.mxu1 %v186_v10 }
  0x10   :  { %369 = vmatmul.mubr.msk.f32.gmra.mxu0 %vm36_vm0, %v27_v13  ;;  %381 = vmatprep.subr.mxu0 %v184_v14 }
  0x11   :  { %382 = vmatpush3.msra.mxu0 %v184_v14  ;;  %419 = vmatprep.subr.mxu1 %v185_v12 }
  0x12   :  { %383 = vmatprep.subr.mxu0 %v183_v15  ;;  %435 = vmatpush3.msra.mxu1 %v185_v12 }
  0x13   :  { %384 = vmatpush3.msra.mxu0 %v183_v15  ;;  %420 = vmatprep.subr.mxu1 %v184_v14 }
  0x14   :  { %385 = vmatprep.subr.mxu0 %v182_v16  ;;  %436 = vmatpush3.msra.mxu1 %v184_v14 }
  0x15   :  { %386 = vmatpush3.msra.mxu0 %v182_v16  ;;  %421 = vmatprep.subr.mxu1 %v183_v15 }
  0x16   :  { %387 = vmatprep.subr.mxu0 %v181_v17  ;;  %437 = vmatpush3.msra.mxu1 %v183_v15 }
  0x17   :  { %388 = vmatpush3.msra.mxu0 %v181_v17  ;;  %422 = vmatprep.subr.mxu1 %v182_v16 }
  0x18   :  { %389 = vmatprep.subr.mxu0 %v180_v18  ;;  %438 = vmatpush3.msra.mxu1 %v182_v16 }
  0x19   :  { %390 = vmatpush3.msra.mxu0 %v180_v18  ;;  %423 = vmatprep.subr.mxu1 %v181_v17 }
  0x1a   :  { %391 = vmatprep.subr.mxu0 %v179_v19  ;;  %439 = vmatpush3.msra.mxu1 %v181_v17 }
  0x1b   :  { %392 = vmatpush3.msra.mxu0 %v179_v19  ;;  %424 = vmatprep.subr.mxu1 %v180_v18 }
  0x1c   :  { %393 = vmatprep.subr.mxu0 %v178_v20  ;;  %440 = vmatpush3.msra.mxu1 %v180_v18 }
  0x1d   :  { %394 = vmatpush3.msra.mxu0 %v178_v20  ;;  %425 = vmatprep.subr.mxu1 %v179_v19 }
  0x1e   :  { %441 = vmatpush3.msra.mxu1 %v179_v19  ;;  %395 = vmatprep.subr.mxu0 %v177_v21 }
  0x1f   :  { %426 = vmatprep.subr.mxu1 %v178_v20  ;;  %396 = vmatpush3.msra.mxu0 %v177_v21 }
  0x20   :  { %442 = vmatpush3.msra.mxu1 %v178_v20  ;;  %397 = vmatprep.subr.mxu0 %v176_v22 }
  0x21   :  { %427 = vmatprep.subr.mxu1 %v177_v21  ;;  %398 = vmatpush3.msra.mxu0 %v176_v22 }
  0x22   :  { %443 = vmatpush3.msra.mxu1 %v177_v21  ;;  %399 = vmatprep.subr.mxu0 %v175_v23 }
  0x23   :  { %428 = vmatprep.subr.mxu1 %v176_v22  ;;  %400 = vmatpush3.msra.mxu0 %v175_v23 }
  0x24   :  { %444 = vmatpush3.msra.mxu1 %v176_v22  ;;  %401 = vmatprep.subr.mxu0 %v174_v24 }
  0x25   :  { %429 = vmatprep.subr.mxu1 %v175_v23  ;;  %402 = vmatpush3.msra.mxu0 %v174_v24 }
  0x26   :  { %445 = vmatpush3.msra.mxu1 %v175_v23 }
  0x27   :  { %430 = vmatprep.subr.mxu1 %v174_v24 }
  0x28   :  { %446 = vmatpush3.msra.mxu1 %v174_v24 }
  0xc4   :  { %v361_v26 = vpop.f32.mrf.mxu0 }
  0xc5   :  { %v133_v27 = vadd.f32 %v361_v26, %v314_v25 }
  0xc6   :  { %v127_v28 = vpop.f32.mrf.mxu0 }
  0xc7   :  { %v128_v29 = vadd.f32 %v314_v25, %v127_v28  ;;  %v167_v32 = vmax.f32 %v133_v27, 0.0 }
  0xc8   :  { %v364_v30 = vpop.f32.mrf.mxu0 }
  0xc9   :  { %v166_v31 = vmax.f32 %v128_v29, 0.0  ;;  %v143_v33 = vadd.f32 %v364_v30, %v314_v25 }
  0xca   :  { %v137_v34 = vpop.f32.mrf.mxu0 }
  0xcb   :  { %403 = vmatprep.mubr.f32.mxu0 %v166_v31  ;;  %v138_v35 = vadd.f32 %v314_v25, %v137_v34  ;;  %v169_v38 = vmax.f32 %v143_v33, 0.0 }
  0xcc   :  { %v367_v36 = vpop.f32.mrf.mxu0  ;;  %404 = vmatmul.mubr.f32.vlgmr.msra.gmra.mxu0 %v167_v32 }
  0xcd   :  { %v168_v37 = vmax.f32 %v138_v35, 0.0  ;;  %v153_v39 = vadd.f32 %v367_v36, %v314_v25 }
  0xce   :  { %v147_v40 = vpop.f32.mrf.mxu0 }
  0xcf   :  { %v148_v41 = vadd.f32 %v314_v25, %v147_v40  ;;  %406 = vmatprep.mubr.f32.mxu1 %v168_v37  ;;  %v171_v44 = vmax.f32 %v153_v39, 0.0 }
  0xd0   :  { %v370_v42 = vpop.f32.mrf.mxu0  ;;  %407 = vmatmul.mubr.f32.vlgmr.msra.gmra.mxu1 %v169_v38 }
  0xd1   :  { %v170_v43 = vmax.f32 %v148_v41, 0.0  ;;  %v163_v45 = vadd.f32 %v370_v42, %v314_v25 }
  0xd2   :  { %v157_v46 = vpop.f32.mrf.mxu0 }
  0xd3   :  { %v158_v47 = vadd.f32 %v314_v25, %v157_v46  ;;  %409 = vmatprep.mubr.f32.mxu1 %v170_v43  ;;  %v173_v49 = vmax.f32 %v163_v45, 0.0 }
  0xd4   :  { %410 = vmatmul.mubr.f32.gmra.mxu1 %v171_v44 }
  0xd5   :  { %v172_v48 = vmax.f32 %v158_v47, 0.0 }
  0xd7   :  { %412 = vmatprep.mubr.f32.mxu1 %v172_v48 }
  0xd8   :  { %413 = vmatmul.mubr.f32.gmra.mxu1 %v173_v49 }
 0x18c   :  { %v405_v51 = vpop.f32.mrf.mxu0 }
 0x18d   :  { %v269_v52 = vadd.f32 %v405_v51, %v323_v50 }
 0x18e   :  { %v263_v53 = vpop.f32.mrf.mxu0 }
 0x18f   :  { %303 = vst.msk [vmem:[%s603_s5 + $0x8] sm:$0xff] %vm36_vm0, %v269_v52  ;;  %v264_v54 = vadd.f32 %v323_v50, %v263_v53 }
 0x190   :  { %v408_v55 = vpop.f32.mrf.mxu1 }
 0x191   :  { %302 = vst.msk [vmem:[%s603_s5] sm:$0xff] %vm36_vm0, %v264_v54  ;;  %v279_v56 = vadd.f32 %v408_v55, %v323_v50 }
 0x192   :  { %v273_v57 = vpop.f32.mrf.mxu1 }
 0x193   :  { %305 = vst.msk [vmem:[%s603_s5 + $0x18] sm:$0xff] %vm36_vm0, %v279_v56  ;;  %v274_v58 = vadd.f32 %v323_v50, %v273_v57 }
 0x194   :  { %v411_v59 = vpop.f32.mrf.mxu1 }
 0x195   :  { %304 = vst.msk [vmem:[%s603_s5 + $0x10] sm:$0xff] %vm36_vm0, %v274_v58  ;;  %v289_v60 = vadd.f32 %v411_v59, %v323_v50 }
 0x196   :  { %v283_v61 = vpop.f32.mrf.mxu1 }
 0x197   :  { %307 = vst.msk [vmem:[%s603_s5 + $0x28] sm:$0xff] %vm36_vm0, %v289_v60  ;;  %v284_v62 = vadd.f32 %v323_v50, %v283_v61 }
 0x198   :  { %v414_v63 = vpop.f32.mrf.mxu1 }
 0x199   :  { %306 = vst.msk [vmem:[%s603_s5 + $0x20] sm:$0xff] %vm36_vm0, %v284_v62  ;;  %v299_v0 = vadd.f32 %v414_v63, %v323_v50 }
 0x19a   :  { %v293_v1 = vpop.f32.mrf.mxu1 }
 0x19b   :  { %309 = vst.msk [vmem:[%s603_s5 + $0x38] sm:$0xff] %vm36_vm0, %v299_v0  ;;  %v294_v2 = vadd.f32 %v323_v50, %v293_v1 }
 0x19d   :  { %308 = vst.msk [vmem:[%s603_s5 + $0x30] sm:$0xff] %vm36_vm0, %v294_v2 }

</bundles_post_ra>
